<compile_context>
chip_gen: v6e
topology: v6e:2x2x1
jax: 0.10.0
libtpu: 0.0.40
codegen_flags: <defaults>
</compile_context>

<pallas_src>
import jax
import jax.numpy as jnp
from jax.experimental import pallas as pl
from jax.experimental.pallas import tpu as pltpu

HIDDEN_DIMS = [128, 64, 32]


def _round_up(n, m):
    return ((n + m - 1) // m) * m


def mlp_kernel(x_ref, w1_ref, wr_ref, b_ref, o_ref):
    """Fused MLP: (x @ W1 + b1) -> ReLU -> ... -> @ W_last + b_last (eval dropout = identity)."""
    b_all = b_ref[...]                                   # (L, D) f32, resident
    # Layer 1: real K = input_size, output padded to D lanes.
    h = jnp.dot(x_ref[...].astype(jnp.bfloat16), w1_ref[...],
                preferred_element_type=jnp.float32)
    h = jnp.maximum(h + b_all[0], 0.0)
    # Remaining layers: zero-padded (D, D) weights; padded columns stay exactly 0
    # through bias(0) + ReLU, so they never contaminate the real columns.
    n_rest = wr_ref.shape[0]
    for l in range(n_rest):
        h = jnp.dot(h.astype(jnp.bfloat16), wr_ref[l],
                    preferred_element_type=jnp.float32) + b_all[l + 1]
        if l < n_rest - 1:                               # no ReLU after the output layer
            h = jnp.maximum(h, 0.0)
    # Lane-dense output: transpose (tb, cols) -> (cols, tb) on the idle XLU and keep only
    # the real output rows; the store is an unmasked, 128-lane-dense vst of real data only.
    out_pad = o_ref.shape[0]
    cols = min(h.shape[1], _round_up(out_pad, 128))
    ht = h[:, :cols].T                                   # (cols, tb) f32
    o_ref[...] = ht[:out_pad, :].astype(o_ref.dtype)


def pack_params(params):
    """One-time packing of [(W, b), ...] (PyTorch Linear: W (in,out), b (1,out)) into
    kernel-resident arrays.  Call once at init; do NOT rebuild per forward call."""
    L = len(params)
    assert L >= 2, "expected at least one hidden layer + output layer"
    in_size = params[0][0].shape[0]
    out_dims = [w.shape[1] for (w, _) in params]
    D = _round_up(max(out_dims), 128)                    # lane-dense common width

    w1 = params[0][0]
    w1p = jnp.zeros((in_size, D), jnp.bfloat16).at[:, :w1.shape[1]].set(
        w1.astype(jnp.bfloat16))
    w_rest = jnp.stack([
        jnp.zeros((D, D), jnp.bfloat16).at[:w.shape[0], :w.shape[1]].set(
            w.astype(jnp.bfloat16))
        for (w, _) in params[1:]
    ], axis=0)                                           # (L-1, D, D)
    b_pack = jnp.zeros((L, D), jnp.float32)
    for l, (_, b) in enumerate(params):
        b_pack = b_pack.at[l, :b.shape[-1]].set(b.reshape(-1).astype(jnp.float32))
    return w1p, w_rest, b_pack


def _choose_block_batch(B, *, target_steps=8, max_tb=2048):
    """>=2 grid steps (>=4 for moderate B) for v7x megacore sharding + DMA/compute overlap;
    tiles grow up to 2048 rows for large B to amortize per-step overhead."""
    if B <= 128:
        return B                                         # single full block (lane dim == B)
    tb = _round_up(-(-B // target_steps), 128)           # cdiv, then multiple of 128
    return min(tb, max_tb)


def _sanitize_tb(tb, B):
    tb = min(int(tb), B)
    if tb < B:
        tb = max(128, (tb // 128) * 128)                 # transposed output needs tb % 128 == 0
    return tb


def regression_model_forward(x, packed, output_size, *, block_batch=None):
    """Fused forward pass of RegressionModel with a single pallas_call.

    x:           (B, input_size) float32
    packed:      output of pack_params(params)  (hoisted out of the per-call path)
    output_size: real number of output columns
    Returns (B, output_size) float32.
    """
    w1p, w_rest, b_pack = packed
    B, in_size = x.shape
    assert in_size == w1p.shape[0]
    D = w1p.shape[1]
    L = 1 + w_rest.shape[0]
    out_pad = _round_up(output_size, 8)

    tb = _choose_block_batch(B) if block_batch is None else _sanitize_tb(block_batch, B)
    grid = (pl.cdiv(B, tb),)

    flops = 2 * B * (in_size * D + (L - 1) * D * D)
    bytes_accessed = int(B * in_size * 4 + out_pad * B * 4
                         + w1p.size * 2 + w_rest.size * 2 + b_pack.size * 4)

    out_t = pl.pallas_call(
        mlp_kernel,
        out_shape=jax.ShapeDtypeStruct((out_pad, B), jnp.float32),
        grid_spec=pltpu.PrefetchScalarGridSpec(
            num_scalar_prefetch=0,
            grid=grid,
            in_specs=[
                pl.BlockSpec((tb, in_size), lambda i: (i, 0)),     # x: batch-tiled
                pl.BlockSpec((in_size, D), lambda i: (0, 0)),      # W1: resident
                pl.BlockSpec((L - 1, D, D), lambda i: (0, 0, 0)),  # W2..WL: resident
                pl.BlockSpec((L, D), lambda i: (0, 0)),            # biases: resident
            ],
            out_specs=pl.BlockSpec((out_pad, tb), lambda i: (0, i)),  # transposed, lane-dense
        ),
        compiler_params=pltpu.CompilerParams(
            dimension_semantics=("parallel",),
            vmem_limit_bytes=32 * 1024 * 1024,
        ),
        cost_estimate=pl.CostEstimate(flops=flops, transcendentals=0,
                                      bytes_accessed=bytes_accessed),
    )(x, w1p, w_rest, b_pack)

    # (out_pad, B) -> (B, output_size): tiny (B x out) op that fuses under the caller's jit.
    return out_t[:output_size, :].T


def init_params(key, input_size, output_size, hidden_dims=HIDDEN_DIMS):
    """Deterministic init mimicking torch.nn.Linear default (U(-1/sqrt(fan_in), +))."""
    dims = [input_size] + list(hidden_dims) + [output_size]
    params = []
    for i in range(len(dims) - 1):
        fan_in, fan_out = dims[i], dims[i + 1]
        key, kw, kb = jax.random.split(key, 3)
        bound = 1.0 / jnp.sqrt(fan_in)
        w = jax.random.uniform(kw, (fan_in, fan_out), jnp.float32, -bound, bound)
        b = jax.random.uniform(kb, (1, fan_out), jnp.float32, -bound, bound)
        params.append((w, b))
    return params


def reference_forward(x, params, matmul_dtype=jnp.float32):
    h = x
    for i, (w, b) in enumerate(params):
        h = jnp.dot(h.astype(matmul_dtype), w.astype(matmul_dtype),
                    preferred_element_type=jnp.float32) + b
        if i < len(params) - 1:
            h = jnp.maximum(h, 0.0)
    return h


if __name__ == "__main__":
    key = jax.random.PRNGKey(0)
    k_x, k_p = jax.random.split(key)

    batch, input_size, output_size = 512, 32, 8
    x = jax.random.normal(k_x, (batch, input_size), jnp.float32)
    params = init_params(k_p, input_size, output_size)

    # Pack once at init (hoisted out of the per-call forward path).
    packed = pack_params(params)

    # batch=512 -> tb=128, grid=(4,): even step count for v7x megacore, >=4 steps for
    # DMA/compute pipelining on v5e/v6e.
    fwd = jax.jit(lambda xx, pk: regression_model_forward(xx, pk, output_size))
    out = jax.block_until_ready(fwd(x, packed))
    assert out.shape == (batch, output_size)

    ref_bf16 = reference_forward(x, params, matmul_dtype=jnp.bfloat16)
    ref_f32 = reference_forward(x, params, matmul_dtype=jnp.float32)
    assert jnp.allclose(out, ref_bf16, atol=2e-3, rtol=2e-3), "mismatch vs bf16-matmul reference"
    assert jnp.allclose(out, ref_f32, atol=5e-2, rtol=5e-2), "mismatch vs f32 reference"

    print("KERNEL_OK")
</pallas_src>

<mosaic_0001>
module attributes {stable_mosaic.version = 11 : i64} {
  func.func @mlp_kernel(%arg0: i32, %arg1: memref<128x32xf32, #tpu.memory_space<vmem>>, %arg2: memref<32x128xbf16, #tpu.memory_space<vmem>>, %arg3: memref<3x128x128xbf16, #tpu.memory_space<vmem>>, %arg4: memref<4x128xf32, #tpu.memory_space<vmem>>, %arg5: memref<8x128xf32, #tpu.memory_space<vmem>>) attributes {dimension_semantics = [#tpu.dimension_semantics<parallel>], iteration_bounds = array<i64: 4>, scalar_prefetch = 0 : i64, scratch_operands = 0 : i64, tpu.core_type = #tpu.core_type<tc>, window_params = [{transform_indices = @transform_0, window_bounds = array<i64: 128, 32>}, {pipeline_mode = #tpu.pipeline_mode<synchronous>, transform_indices = @transform_1, window_bounds = array<i64: 32, 128>}, {pipeline_mode = #tpu.pipeline_mode<synchronous>, transform_indices = @transform_2, window_bounds = array<i64: 3, 128, 128>}, {pipeline_mode = #tpu.pipeline_mode<synchronous>, transform_indices = @transform_3, window_bounds = array<i64: 4, 128>}, {transform_indices = @transform_4, window_bounds = array<i64: 8, 128>}]} {
    %c0 = arith.constant 0 : index
    %c0_0 = arith.constant 0 : index
    %0 = vector.load %arg4[%c0, %c0_0] : memref<4x128xf32, #tpu.memory_space<vmem>>, vector<4x128xf32>
    %c0_1 = arith.constant 0 : index
    %c0_2 = arith.constant 0 : index
    %1 = vector.load %arg1[%c0_1, %c0_2] : memref<128x32xf32, #tpu.memory_space<vmem>>, vector<128x32xf32>
    %2 = arith.truncf %1 : vector<128x32xf32> to vector<128x32xbf16>
    %c0_3 = arith.constant 0 : index
    %c0_4 = arith.constant 0 : index
    %3 = vector.load %arg2[%c0_3, %c0_4] : memref<32x128xbf16, #tpu.memory_space<vmem>>, vector<32x128xbf16>
    %cst = arith.constant dense<0.000000e+00> : vector<128x128xf32>
    %4 = tpu.matmul %2, %3, %cst {dimension_numbers = #tpu.dot_dimension_numbers<[1], [0], [0], [1], [0, 0, 1, 1], [], []>} : vector<128x32xbf16>, vector<32x128xbf16>, vector<128x128xf32> -> vector<128x128xf32>
    %5 = vector.extract_strided_slice %0 {offsets = [0, 0], sizes = [1, 128], strides = [1, 1]} : vector<4x128xf32> to vector<1x128xf32>
    %6 = vector.shape_cast %5 : vector<1x128xf32> to vector<128xf32>
    %7 = vector.shape_cast %6 : vector<128xf32> to vector<1x128xf32>
    %8 = vector.broadcast %7 : vector<1x128xf32> to vector<128x128xf32>
    %9 = arith.addf %4, %8 : vector<128x128xf32>
    %cst_5 = arith.constant 0.000000e+00 : f32
    %10 = vector.broadcast %cst_5 : f32 to vector<128x128xf32>
    %11 = arith.maximumf %9, %10 : vector<128x128xf32>
    %12 = arith.truncf %11 : vector<128x128xf32> to vector<128x128xbf16>
    %c0_6 = arith.constant 0 : index
    %c0_7 = arith.constant 0 : index
    %c0_8 = arith.constant 0 : index
    %13 = vector.load %arg3[%c0_6, %c0_7, %c0_8] : memref<3x128x128xbf16, #tpu.memory_space<vmem>>, vector<1x128x128xbf16>
    %14 = vector.shape_cast %13 : vector<1x128x128xbf16> to vector<128x128xbf16>
    %cst_9 = arith.constant dense<0.000000e+00> : vector<128x128xf32>
    %15 = tpu.matmul %12, %14, %cst_9 {dimension_numbers = #tpu.dot_dimension_numbers<[1], [0], [0], [1], [0, 0, 1, 1], [], []>} : vector<128x128xbf16>, vector<128x128xbf16>, vector<128x128xf32> -> vector<128x128xf32>
    %16 = vector.extract_strided_slice %0 {offsets = [1, 0], sizes = [1, 128], strides = [1, 1]} : vector<4x128xf32> to vector<1x128xf32>
    %17 = vector.shape_cast %16 : vector<1x128xf32> to vector<128xf32>
    %18 = vector.shape_cast %17 : vector<128xf32> to vector<1x128xf32>
    %19 = vector.broadcast %18 : vector<1x128xf32> to vector<128x128xf32>
    %20 = arith.addf %15, %19 : vector<128x128xf32>
    %cst_10 = arith.constant 0.000000e+00 : f32
    %21 = vector.broadcast %cst_10 : f32 to vector<128x128xf32>
    %22 = arith.maximumf %20, %21 : vector<128x128xf32>
    %23 = arith.truncf %22 : vector<128x128xf32> to vector<128x128xbf16>
    %c1 = arith.constant 1 : index
    %c0_11 = arith.constant 0 : index
    %c0_12 = arith.constant 0 : index
    %24 = vector.load %arg3[%c1, %c0_11, %c0_12] : memref<3x128x128xbf16, #tpu.memory_space<vmem>>, vector<1x128x128xbf16>
    %25 = vector.shape_cast %24 : vector<1x128x128xbf16> to vector<128x128xbf16>
    %cst_13 = arith.constant dense<0.000000e+00> : vector<128x128xf32>
    %26 = tpu.matmul %23, %25, %cst_13 {dimension_numbers = #tpu.dot_dimension_numbers<[1], [0], [0], [1], [0, 0, 1, 1], [], []>} : vector<128x128xbf16>, vector<128x128xbf16>, vector<128x128xf32> -> vector<128x128xf32>
    %27 = vector.extract_strided_slice %0 {offsets = [2, 0], sizes = [1, 128], strides = [1, 1]} : vector<4x128xf32> to vector<1x128xf32>
    %28 = vector.shape_cast %27 : vector<1x128xf32> to vector<128xf32>
    %29 = vector.shape_cast %28 : vector<128xf32> to vector<1x128xf32>
    %30 = vector.broadcast %29 : vector<1x128xf32> to vector<128x128xf32>
    %31 = arith.addf %26, %30 : vector<128x128xf32>
    %cst_14 = arith.constant 0.000000e+00 : f32
    %32 = vector.broadcast %cst_14 : f32 to vector<128x128xf32>
    %33 = arith.maximumf %31, %32 : vector<128x128xf32>
    %34 = arith.truncf %33 : vector<128x128xf32> to vector<128x128xbf16>
    %c2 = arith.constant 2 : index
    %c0_15 = arith.constant 0 : index
    %c0_16 = arith.constant 0 : index
    %35 = vector.load %arg3[%c2, %c0_15, %c0_16] : memref<3x128x128xbf16, #tpu.memory_space<vmem>>, vector<1x128x128xbf16>
    %36 = vector.shape_cast %35 : vector<1x128x128xbf16> to vector<128x128xbf16>
    %cst_17 = arith.constant dense<0.000000e+00> : vector<128x128xf32>
    %37 = tpu.matmul %34, %36, %cst_17 {dimension_numbers = #tpu.dot_dimension_numbers<[1], [0], [0], [1], [0, 0, 1, 1], [], []>} : vector<128x128xbf16>, vector<128x128xbf16>, vector<128x128xf32> -> vector<128x128xf32>
    %38 = vector.extract_strided_slice %0 {offsets = [3, 0], sizes = [1, 128], strides = [1, 1]} : vector<4x128xf32> to vector<1x128xf32>
    %39 = vector.shape_cast %38 : vector<1x128xf32> to vector<128xf32>
    %40 = vector.shape_cast %39 : vector<128xf32> to vector<1x128xf32>
    %41 = vector.broadcast %40 : vector<1x128xf32> to vector<128x128xf32>
    %42 = arith.addf %37, %41 : vector<128x128xf32>
    %43 = tpu.transpose %42, [1, 0] : vector<128x128xf32> -> vector<128x128xf32>
    %44 = vector.extract_strided_slice %43 {offsets = [0, 0], sizes = [8, 128], strides = [1, 1]} : vector<128x128xf32> to vector<8x128xf32>
    %c0_18 = arith.constant 0 : index
    %c0_19 = arith.constant 0 : index
    %45 = vector.load %arg5[%c0_18, %c0_19] : memref<8x128xf32, #tpu.memory_space<vmem>>, vector<8x128xf32>
    tpu.vector_store %arg5[%c0_18, %c0_19], %44 {strides = array<i32>} : memref<8x128xf32, #tpu.memory_space<vmem>>, vector<8x128xf32>,
    return
  }
  func.func @transform_0(%arg0: i32) -> (i32, i32) {
    %c0_i32 = arith.constant 0 : i32
    %c0_i32_0 = arith.constant 0 : i32
    return %arg0, %c0_i32 : i32, i32
  }
  func.func @transform_1(%arg0: i32) -> (i32, i32) {
    %c0_i32 = arith.constant 0 : i32
    %c0_i32_0 = arith.constant 0 : i32
    %c0_i32_1 = arith.constant 0 : i32
    return %c0_i32, %c0_i32_0 : i32, i32
  }
  func.func @transform_2(%arg0: i32) -> (i32, i32, i32) {
    %c0_i32 = arith.constant 0 : i32
    %c0_i32_0 = arith.constant 0 : i32
    %c0_i32_1 = arith.constant 0 : i32
    %c0_i32_2 = arith.constant 0 : i32
    return %c0_i32, %c0_i32_0, %c0_i32_1 : i32, i32, i32
  }
  func.func @transform_3(%arg0: i32) -> (i32, i32) {
    %c0_i32 = arith.constant 0 : i32
    %c0_i32_0 = arith.constant 0 : i32
    %c0_i32_1 = arith.constant 0 : i32
    return %c0_i32, %c0_i32_0 : i32, i32
  }
  func.func @transform_4(%arg0: i32) -> (i32, i32) {
    %c0_i32 = arith.constant 0 : i32
    %c0_i32_0 = arith.constant 0 : i32
    return %c0_i32, %arg0 : i32, i32
  }
}

</mosaic_0001>

<bundles_post_ra>
// kernel: _lambda_.1
= control target key start
LH: loop header
LB: loop body
LE: loop exit
PB: predicated region body
PF: predicated region fallthrough
CT: control target
= control target key end

     0   :  { %9 = vsyncpa [#allocation3], 0  ;;  %s1702_s0 = inlined_call_operand.vmem [shape: f32[512,32], index: 0, kind: input, shape index: {}]   ;;  %s1703_s1 = inlined_call_operand.vmem [shape: bf16[32,128], index: 1, kind: input, shape index: {}]   ;;  %s1704_s2 = inlined_call_operand.vmem [shape: bf16[3,128,128], index: 2, kind: input, shape index: {}]   ;;  %s1705_s3 = inlined_call_operand.vmem [shape: f32[4,128], index: 3, kind: input, shape index: {}]   ;;  %s1706_s4 = inlined_call_operand.hbm [shape: f32[8,512], index: 4, kind: output, shape index: {}]  }
   0x1   :  { %11 = vsyncpa [#allocation3 + $0x1], 0  ;;  %s1461_s15 = smov 0   ;;  %s1463_s16 = smov 0  }
   0x2   :  { %s1465_s17 = smov 0   ;;  %s1467_s18 = smov 0  }
   0x3 LB: > { %s1482_s19 = sadd.s32 4294967295, %s1433_s18   ;;  %s1041_s20 = sadd.s32 4294967294, %s1433_s18   ;;  %s1433_s18 = sphi %s1467_s18, %s1712_s18   ;;  %s1429_s17 = sphi %s1465_s17, %s1711_s17   ;;  %s1425_s16 = sphi %s1463_s16, %s1710_s16   ;;  %s1421_s15 = sphi %s1461_s15, %s1709_s15  }
   0x4   : > { %s1486_s21 = sadd.s32 1, %s1433_s18   ;;  %s113_s22 = sadd.s32 1, %s1429_s17 }
   0x5   : > { %s110_s23 = ssub.s32 %s1433_s18, %s1486_s21  ;;  %p123_p0 = scmp.ne.s32.totalorder %s1429_s17, %s1425_s16 }
   0x6   : > { %p111_p1 = scmp.eq.s32.totalorder %s110_s23, 0  ;;  %p124_p2 = scmp.eq.s32.totalorder %s1482_s19, 3 }
   0x7   : > { %p129_p3 = scmp.ne.s32.totalorder %s1425_s16, %s1421_s15  ;;  %p130_p4 = scmp.eq.s32.totalorder %s1041_s20, 3 }
   0x8   : > { %s1497_s24 = scalar_select %p111_p1, %s1429_s17, %s113_s22  }
   0x9   : > { %p1499_p5 = por %p124_p2, %p123_p0  ;;  %p1503_p6 = por %p130_p4, %p129_p3 }
   0xa   : > { %p1044_p7 = scmp.ge.s32.totalorder %s1433_s18, 1  ;;  %p166_p8 = scmp.lt.s32.totalorder %s1433_s18, 5 }
   0xc   : > { %p167_p9 = pnand %p1044_p7, %p166_p8 }
   0xd   : > { %s1046_s29 = sshll.u32 (!%p167_p9), %s1482_s19, 4  ;;  %s189_s9 = sand.u32 (!%p167_p9), 1, %s1425_s16  }
   0xe   : > { %170 = sbr.rel (%p167_p9) target bundleno = 981 (0x3d5), region = 36  ;;  %p193_p10 = scmp.lt.s32.totalorder (!%p167_p9), %s1046_s29, 63 }
   0xf   : > { %s969_s23 = scalar_lea.sflag (!%p167_p9), [#allocation3], %s189_s9  ;;  %s1435_s28 = smov (!%p167_p9), [#allocation2]  }
  0x13   : > { %v1347_v0 = vld [vmem:[%s1703_s1 + $0x8] sm:$0xff]   ;;  %v1348_v1 = vld [vmem:[%s1703_s1] sm:$0xff]   ;;  %v1349_v2 = vld [vmem:[%s1704_s2 + $0x38] sm:$0xff]   ;;  %s1714_s29 = smov (!%p193_p10, %s1046_s29), 63  ;;  %vm244_vm0 = vcmask 261120   ;;  %v228_v39 = vlaneseq }
  0x14   : > { %1176 = vmatprep.subr.bf16.mxu0 %v1347_v0  ;;  %v1350_v3 = vld [vmem:[%s1704_s2 + $0x30] sm:$0xff]   ;;  %1196 = vmatprep.subr.bf16.mxu1 %v1349_v2  ;;  %s1047_s10 = sshll.u32 %s1714_s29, 3  ;;  %v1351_v4 = vld [vmem:[%s1704_s2 + $0x28] sm:$0xff]   ;;  %v1352_v14 = vld [vmem:[%s1704_s2 + $0x20] sm:$0xff]   ;;  %s1377_s29 = sshll.u32 %s1435_s28, 4  ;;  %s1378_s29 = int_to_ptr.vmem [resolvable:$false] %s1377_s29 }
  0x15   : > { %1177 = vmatpush3.bf16.msra.mxu0 %v1347_v0  ;;  %1197 = vmatpush3.bf16.msra.mxu1 %v1349_v2  ;;  %s1525_s13 = scalar_lea.vmem %s1702_s0, %s1047_s10  ;;  %v1353_v19 = vld [vmem:[%s1704_s2 + $0x18] sm:$0xff]   ;;  %v1354_v31 = vld [vmem:[%s1704_s2 + $0x10] sm:$0xff]   ;;  %v1355_v32 = vld [vmem:[%s1704_s2 + $0x8] sm:$0xff]   ;;  %v1584_v40 = vshrl.u32 %v228_v39, 7  ;;  %s1045_s10 = sshll.u32 %s189_s9, 3 }
  0x16   : > { %1178 = vmatprep.subr.bf16.mxu0 %v1348_v1  ;;  %1198 = vmatprep.subr.bf16.mxu1 %v1350_v3  ;;  %v200_v5 = vld [vmem:[%s1525_s13] sm:$0xff]  ;;  %v201_v6 = vld [vmem:[%s1525_s13 + $0x8] sm:$0xff]  ;;  %v202_v7 = vld [vmem:[%s1525_s13 + $0x10] sm:$0xff]  ;;  %s191_s11 = scalar_lea.vmem [#allocation2], %s1045_s10 }
  0x17   : > { %v216_v8 = vpack.c.bf16 %v201_v6, %v200_v5  ;;  %v203_v9 = vld [vmem:[%s1525_s13 + $0x18] sm:$0xff]  ;;  %v204_v10 = vld [vmem:[%s1525_s13 + $0x20] sm:$0xff]  ;;  %v205_v11 = vld [vmem:[%s1525_s13 + $0x28] sm:$0xff]  ;;  %v230_v41 = vsub.s32 0, %v1584_v40  ;;  %s982_s12 = sshll.u32 %s191_s11, 4  ;;  %s1664_s12 = int_to_ptr.vmem [resolvable:$true] %s982_s12 }
  0x18   : > { %v217_v12 = vpack.c.bf16 %v203_v9, %v202_v7  ;;  %v218_v13 = vpack.c.bf16 %v205_v11, %v204_v10  ;;  %v206_v15 = vld [vmem:[%s1525_s13 + $0x30] sm:$0xff]  ;;  %v207_v16 = vld [vmem:[%s1525_s13 + $0x38] sm:$0xff]  ;;  %v208_v17 = vld [vmem:[%s1525_s13 + $0x40] sm:$0xff]  ;;  %s1373_s27 = scalar_lea.vmem %s1664_s12, 128  ;;  %p1380_p0 = scmp.lt.s32.totalorder %s1664_s12, %s1378_s29 }
  0x19   : > { %1179 = vmatpush3.bf16.msra.mxu0 %v1348_v1  ;;  %1199 = vmatpush3.bf16.msra.mxu1 %v1350_v3  ;;  %v209_v18 = vld [vmem:[%s1525_s13 + $0x48] sm:$0xff]  ;;  %v219_v20 = vpack.c.bf16 %v207_v16, %v206_v15  ;;  %v210_v22 = vld [vmem:[%s1525_s13 + $0x50] sm:$0xff]  ;;  %v211_v23 = vld [vmem:[%s1525_s13 + $0x58] sm:$0xff]  ;;  %p1374_p11 = scmp.ne.s32.totalorder %s1664_s12, %s1373_s27 }
  0x1a   : > { %1180 = vmatprep.mubr.msk.bf16.mxu0 %vm244_vm0, %v216_v8  ;;  %1200 = vmatprep.subr.bf16.mxu1 %v1351_v4  ;;  %v220_v21 = vpack.c.bf16 %v209_v18, %v208_v17  ;;  %v212_v24 = vld [vmem:[%s1525_s13 + $0x60] sm:$0xff]  ;;  %v213_v25 = vld [vmem:[%s1525_s13 + $0x68] sm:$0xff]  ;;  %v221_v26 = vpack.c.bf16 %v211_v23, %v210_v22  ;;  %v214_v28 = vld [vmem:[%s1525_s13 + $0x70] sm:$0xff] }
  0x1b   : > { %v222_v27 = vpack.c.bf16 %v213_v25, %v212_v24  ;;  %v215_v29 = vld [vmem:[%s1525_s13 + $0x78] sm:$0xff]  ;;  %v1356_v33 = vld [vmem:[%s1704_s2] sm:$0xff]   ;;  %v1358_v35 = vld [vmem:[%s1704_s2 + $0x70] sm:$0xff]   ;;  %s1115_s13 = sshll.u32 %s1482_s19, 7  ;;  %p1375_p12 = pnand %p1374_p11, %p1499_p5 }
  0x1c   : > { %1181 = vmatmul.mubr.msk.bf16.vlgmr.msra.gmra.mxu0 %vm244_vm0, %v217_v12  ;;  %v223_v30 = vpack.c.bf16 %v215_v29, %v214_v28  ;;  %v1357_v34 = vld [vmem:[%s1704_s2 + $0x78] sm:$0xff]   ;;  %v1359_v36 = vld [vmem:[%s1704_s2 + $0x68] sm:$0xff]   ;;  %v1360_v37 = vld [vmem:[%s1704_s2 + $0x60] sm:$0xff]   ;;  %s980_s22 = scalar_lea.hbm %s1706_s4, %s1115_s13  ;;  %s1379_s19 = scalar_lea.vmem %s1378_s29, 256 }
  0x1d   : > { %1184 = vmatprep.mubr.msk.bf16.mxu0 %vm244_vm0, %v218_v13  ;;  %1201 = vmatpush3.bf16.msra.mxu1 %v1351_v4  ;;  %v1361_v38 = vld [vmem:[%s1704_s2 + $0x58] sm:$0xff]   ;;  %v1590_v42 = vld [vmem:[%s1705_s3] sm:$0xf]  ;;  %p1376_p13 = pneg %p1375_p12  ;;  %p1381_p1 = scmp.lt.s32.totalorder %s1379_s19, %s1373_s27 }
  0x1e   : > { %1202 = vmatprep.subr.bf16.mxu1 %v1352_v14  ;;  %1228 = vmatprep.subr.bf16.mxu0 %v1357_v34  ;;  %v231_v44 = vrot.slane %v1590_v42, %v230_v41  ;;  %v1365_v39 = vld [vmem:[%s1704_s2 + $0xb8] sm:$0xff]   ;;  %v1366_v41 = vld [vmem:[%s1704_s2 + $0xb0] sm:$0xff]  }
  0x1f   : > { %1229 = vmatpush3.bf16.msra.mxu0 %v1357_v34  ;;  %p1382_p2 = por %p1381_p1, %p1380_p0 }
  0x20   : > { %1230 = vmatprep.subr.bf16.mxu0 %v1358_v35 }
  0x21   : > { %1203 = vmatpush3.bf16.msra.mxu1 %v1352_v14  ;;  %p1383_p3 = pnand %p1382_p2, %p1376_p13 }
  0x22   : > { %1204 = vmatprep.subr.bf16.mxu1 %v1353_v19 }
  0x23   : > { %1231 = vmatpush3.bf16.msra.mxu0 %v1358_v35 }
  0x24   : > { %1185 = vmatmul.mubr.msk.bf16.gmra.mxu0 %vm244_vm0, %v219_v20  ;;  %1232 = vmatprep.subr.bf16.mxu0 %v1359_v36 }
  0x25   : > { %1188 = vmatprep.mubr.msk.bf16.mxu0 %vm244_vm0, %v220_v21  ;;  %1205 = vmatpush3.bf16.msra.mxu1 %v1353_v19 }
  0x26   : > { %1206 = vmatprep.subr.bf16.mxu1 %v1354_v31 }
  0x27   : > { %1233 = vmatpush3.bf16.msra.mxu0 %v1359_v36  ;;  %v1362_v36 = vld [vmem:[%s1704_s2 + $0x50] sm:$0xff]  }
  0x28   : > { %1234 = vmatprep.subr.bf16.mxu0 %v1360_v37 }
  0x29   : > { %1207 = vmatpush3.bf16.msra.mxu1 %v1354_v31 }
  0x2a   : > { %1208 = vmatprep.subr.bf16.mxu1 %v1355_v32 }
  0x2b   : > { %1235 = vmatpush3.bf16.msra.mxu0 %v1360_v37  ;;  %v1363_v37 = vld [vmem:[%s1704_s2 + $0x48] sm:$0xff]  }
  0x2c   : > { %1189 = vmatmul.mubr.msk.bf16.gmra.mxu0 %vm244_vm0, %v221_v26  ;;  %1236 = vmatprep.subr.bf16.mxu0 %v1361_v38 }
  0x2d   : > { %1192 = vmatprep.mubr.msk.bf16.mxu0 %vm244_vm0, %v222_v27  ;;  %1209 = vmatpush3.bf16.msra.mxu1 %v1355_v32 }
  0x2e   : > { %1210 = vmatprep.subr.bf16.mxu1 %v1356_v33 }
  0x2f   : > { %1237 = vmatpush3.bf16.msra.mxu0 %v1361_v38  ;;  %v1364_v38 = vld [vmem:[%s1704_s2 + $0x40] sm:$0xff]  }
  0x30   : > { %1238 = vmatprep.subr.bf16.mxu0 %v1362_v36 }
  0x31   : > { %1211 = vmatpush3.bf16.msra.mxu1 %v1356_v33 }
  0x32   : > { %1292 = vmatprep.subr.bf16.mxu1 %v1365_v39 }
  0x33   : > { %1239 = vmatpush3.bf16.msra.mxu0 %v1362_v36 }
  0x34   : > { %1193 = vmatmul.mubr.msk.bf16.gmra.mxu0 %vm244_vm0, %v223_v30  ;;  %1240 = vmatprep.subr.bf16.mxu0 %v1363_v37 }
  0x37   : > { %1241 = vmatpush3.bf16.msra.mxu0 %v1363_v37 }
  0x38   : > { %1242 = vmatprep.subr.bf16.mxu0 %v1364_v38 }
  0x3b   : > { %1243 = vmatpush3.bf16.msra.mxu0 %v1364_v38 }
  0x3c   : > { %1260 = vmatprep.subr.bf16.mxu0 %v1365_v39 }
  0xdc   : > { %v1182_v43 = vpop.f32.mrf.mxu0 }
  0xdd   : > { %v312_v49 = vadd.f32 %v1182_v43, %v231_v44  ;;  %v1367_v43 = vld [vmem:[%s1704_s2 + $0xa8] sm:$0xff]  }
  0xde   : > { %v303_v45 = vpop.f32.mrf.mxu0 }
  0xdf   : > { %v304_v47 = vadd.f32 %v303_v45, %v231_v44  ;;  %v368_v56 = vmax.f32 %v312_v49, 0.0  ;;  %v1620_v45 = vld [vmem:[%s1704_s2 + $0x98] sm:$0xff]  }
  0xe0   : > { %v1183_v46 = vpop.f32.mrf.mxu0 }
  0xe1   : > { %v315_v48 = vadd.f32 %v1183_v46, %v231_v44  ;;  %v366_v54 = vmax.f32 %v304_v47, 0.0  ;;  %v408_v46 = vsub.s32 1, %v1584_v40 }
  0xe2   : > { %v306_v50 = vpop.f32.mrf.mxu0 }
  0xe3   : > { %v307_v51 = vadd.f32 %v306_v50, %v231_v44  ;;  %v369_v52 = vmax.f32 %v315_v48, 0.0  ;;  %v1627_v48 = vrot.slane %v1590_v42, %v408_v46 }
  0xe4   : > { %v1186_v53 = vpop.f32.mrf.mxu0 }
  0xe5   : > { %v367_v55 = vmax.f32 %v307_v51, 0.0  ;;  %v328_v57 = vadd.f32 %v1186_v53, %v231_v44  ;;  %v383_v61 = vpack.c.bf16 %v369_v52, %v368_v56 }
  0xe6   : > { %v319_v58 = vpop.f32.mrf.mxu0 }
  0xe7   : > { %v320_v59 = vadd.f32 %v319_v58, %v231_v44  ;;  %v382_v60 = vpack.c.bf16 %v367_v55, %v366_v54  ;;  %v372_v0 = vmax.f32 %v328_v57, 0.0 }
  0xe8   : > { %v1187_v62 = vpop.f32.mrf.mxu0 }
  0xe9   : > { %v331_v63 = vadd.f32 %v1187_v62, %v231_v44  ;;  %1212 = vmatprep.mubr.bf16.mxu1 %v382_v60  ;;  %v370_v2 = vmax.f32 %v320_v59, 0.0 }
  0xea   : > { %v322_v1 = vpop.f32.mrf.mxu0  ;;  %1213 = vmatmul.mubr.bf16.vlgmr.msra.gmra.mxu1 %v383_v61 }
  0xeb   : > { %v373_v3 = vmax.f32 %v331_v63, 0.0  ;;  %v323_v4 = vadd.f32 %v322_v1, %v231_v44  ;;  %1300 = vmatpush3.bf16.msra.mxu1 %v1365_v39 }
  0xec   : > { %v1190_v5 = vpop.f32.mrf.mxu0  ;;  %1293 = vmatprep.subr.bf16.mxu1 %v1366_v41 }
  0xed   : > { %v371_v6 = vmax.f32 %v323_v4, 0.0  ;;  %v385_v7 = vpack.c.bf16 %v373_v3, %v372_v0  ;;  %v344_v8 = vadd.f32 %v1190_v5, %v231_v44 }
  0xee   : > { %v335_v9 = vpop.f32.mrf.mxu0 }
  0xef   : > { %v384_v10 = vpack.c.bf16 %v371_v6, %v370_v2  ;;  %v336_v11 = vadd.f32 %v335_v9, %v231_v44  ;;  %v376_v14 = vmax.f32 %v344_v8, 0.0  ;;  %1301 = vmatpush3.bf16.msra.mxu1 %v1366_v41 }
  0xf0   : > { %v1191_v12 = vpop.f32.mrf.mxu0  ;;  %1294 = vmatprep.subr.bf16.mxu1 %v1367_v43 }
  0xf1   : > { %v347_v13 = vadd.f32 %v1191_v12, %v231_v44  ;;  %1216 = vmatprep.mubr.bf16.mxu1 %v384_v10  ;;  %v374_v16 = vmax.f32 %v336_v11, 0.0 }
  0xf2   : > { %v338_v15 = vpop.f32.mrf.mxu0  ;;  %1217 = vmatmul.mubr.bf16.gmra.mxu1 %v385_v7 }
  0xf3   : > { %v377_v17 = vmax.f32 %v347_v13, 0.0  ;;  %v339_v18 = vadd.f32 %v338_v15, %v231_v44  ;;  %1302 = vmatpush3.bf16.msra.mxu1 %v1367_v43 }
  0xf4   : > { %v1194_v19 = vpop.f32.mrf.mxu0 }
  0xf5   : > { %v375_v20 = vmax.f32 %v339_v18, 0.0  ;;  %v387_v21 = vpack.c.bf16 %v377_v17, %v376_v14  ;;  %v360_v22 = vadd.f32 %v1194_v19, %v231_v44 }
  0xf6   : > { %v351_v23 = vpop.f32.mrf.mxu0 }
  0xf7   : > { %v386_v24 = vpack.c.bf16 %v375_v20, %v374_v16  ;;  %v352_v25 = vadd.f32 %v351_v23, %v231_v44  ;;  %v380_v28 = vmax.f32 %v360_v22, 0.0 }
  0xf8   : > { %v1195_v26 = vpop.f32.mrf.mxu0 }
  0xf9   : > { %v363_v27 = vadd.f32 %v1195_v26, %v231_v44  ;;  %1220 = vmatprep.mubr.bf16.mxu1 %v386_v24  ;;  %v378_v30 = vmax.f32 %v352_v25, 0.0 }
  0xfa   : > { %v354_v29 = vpop.f32.mrf.mxu0  ;;  %1221 = vmatmul.mubr.bf16.gmra.mxu1 %v387_v21 }
  0xfb   : > { %v381_v31 = vmax.f32 %v363_v27, 0.0  ;;  %v355_v32 = vadd.f32 %v354_v29, %v231_v44  ;;  %v1614_v44 = vld [vmem:[%s1704_s2 + $0xa0] sm:$0xff]  }
  0xfc   : > { %1295 = vmatprep.subr.bf16.mxu1 %v1614_v44 }
  0xfd   : > { %v379_v33 = vmax.f32 %v355_v32, 0.0  ;;  %v389_v34 = vpack.c.bf16 %v381_v31, %v380_v28  ;;  %1303 = vmatpush3.bf16.msra.mxu1 %v1614_v44 }
  0xfe   : > { %1296 = vmatprep.subr.bf16.mxu1 %v1620_v45 }
  0xff   : > { %v388_v35 = vpack.c.bf16 %v379_v33, %v378_v30 }
 0x101   : > { %1224 = vmatprep.mubr.bf16.mxu1 %v388_v35  ;;  %1304 = vmatpush3.bf16.msra.mxu1 %v1620_v45 }
 0x102   : > { %1225 = vmatmul.mubr.bf16.gmra.mxu1 %v389_v34 }
 0x1aa   : > { %v1214_v47 = vpop.f32.mrf.mxu1 }
 0x1ab   : > { %v501_v53 = vadd.f32 %v1214_v47, %v1627_v48 }
 0x1ac   : > { %v492_v49 = vpop.f32.mrf.mxu1 }
 0x1ad   : > { %v493_v51 = vadd.f32 %v492_v49, %v1627_v48  ;;  %v557_v60 = vmax.f32 %v501_v53, 0.0 }
 0x1ae   : > { %v1215_v50 = vpop.f32.mrf.mxu1 }
 0x1af   : > { %v504_v52 = vadd.f32 %v1215_v50, %v1627_v48  ;;  %v555_v58 = vmax.f32 %v493_v51, 0.0 }
 0x1b0   : > { %v495_v54 = vpop.f32.mrf.mxu1 }
 0x1b1   : > { %v496_v55 = vadd.f32 %v495_v54, %v1627_v48  ;;  %v558_v56 = vmax.f32 %v504_v52, 0.0 }
 0x1b2   : > { %v1218_v57 = vpop.f32.mrf.mxu1 }
 0x1b3   : > { %v556_v59 = vmax.f32 %v496_v55, 0.0  ;;  %v572_v63 = vpack.c.bf16 %v558_v56, %v557_v60  ;;  %v517_v3 = vadd.f32 %v1218_v57, %v1627_v48 }
 0x1b4   : > { %v508_v61 = vpop.f32.mrf.mxu1 }
 0x1b5   : > { %v571_v62 = vpack.c.bf16 %v556_v59, %v555_v58  ;;  %v509_v1 = vadd.f32 %v508_v61, %v1627_v48  ;;  %v561_v10 = vmax.f32 %v517_v3, 0.0 }
 0x1b6   : > { %v1219_v0 = vpop.f32.mrf.mxu1 }
 0x1b7   : > { %v520_v2 = vadd.f32 %v1219_v0, %v1627_v48  ;;  %1244 = vmatprep.mubr.bf16.mxu0 %v571_v62  ;;  %v559_v8 = vmax.f32 %v509_v1, 0.0 }
 0x1b8   : > { %v511_v4 = vpop.f32.mrf.mxu1  ;;  %1245 = vmatmul.mubr.bf16.vlgmr.msra.gmra.mxu0 %v572_v63 }
 0x1b9   : > { %v512_v5 = vadd.f32 %v511_v4, %v1627_v48  ;;  %1261 = vmatpush3.bf16.msra.mxu0 %v1365_v39  ;;  %v562_v6 = vmax.f32 %v520_v2, 0.0 }
 0x1ba   : > { %v1222_v7 = vpop.f32.mrf.mxu1  ;;  %1262 = vmatprep.subr.bf16.mxu0 %v1366_v41 }
 0x1bb   : > { %v560_v9 = vmax.f32 %v512_v5, 0.0  ;;  %v533_v11 = vadd.f32 %v1222_v7, %v1627_v48  ;;  %v574_v15 = vpack.c.bf16 %v562_v6, %v561_v10 }
 0x1bc   : > { %v524_v12 = vpop.f32.mrf.mxu1 }
 0x1bd   : > { %v573_v13 = vpack.c.bf16 %v560_v9, %v559_v8  ;;  %v525_v14 = vadd.f32 %v524_v12, %v1627_v48  ;;  %1263 = vmatpush3.bf16.msra.mxu0 %v1366_v41  ;;  %v565_v18 = vmax.f32 %v533_v11, 0.0  ;;  %v1370_v41 = vld [vmem:[%s1704_s2 + $0x90] sm:$0xff]  }
 0x1be   : > { %v1223_v16 = vpop.f32.mrf.mxu1  ;;  %1264 = vmatprep.subr.bf16.mxu0 %v1367_v43  ;;  %1297 = vmatprep.subr.bf16.mxu1 %v1370_v41 }
 0x1bf   : > { %v536_v17 = vadd.f32 %v1223_v16, %v1627_v48  ;;  %1248 = vmatprep.mubr.bf16.mxu0 %v573_v13  ;;  %v563_v20 = vmax.f32 %v525_v14, 0.0  ;;  %1305 = vmatpush3.bf16.msra.mxu1 %v1370_v41 }
 0x1c0   : > { %v527_v19 = vpop.f32.mrf.mxu1  ;;  %1249 = vmatmul.mubr.bf16.gmra.mxu0 %v574_v15 }
 0x1c1   : > { %v566_v21 = vmax.f32 %v536_v17, 0.0  ;;  %v528_v22 = vadd.f32 %v527_v19, %v1627_v48  ;;  %1265 = vmatpush3.bf16.msra.mxu0 %v1367_v43  ;;  %v1371_v43 = vld [vmem:[%s1704_s2 + $0x88] sm:$0xff]  }
 0x1c2   : > { %v1226_v23 = vpop.f32.mrf.mxu1  ;;  %1266 = vmatprep.subr.bf16.mxu0 %v1614_v44  ;;  %1298 = vmatprep.subr.bf16.mxu1 %v1371_v43 }
 0x1c3   : > { %v564_v24 = vmax.f32 %v528_v22, 0.0  ;;  %v576_v25 = vpack.c.bf16 %v566_v21, %v565_v18  ;;  %v549_v26 = vadd.f32 %v1226_v23, %v1627_v48  ;;  %1306 = vmatpush3.bf16.msra.mxu1 %v1371_v43 }
 0x1c4   : > { %v540_v27 = vpop.f32.mrf.mxu1 }
 0x1c5   : > { %v575_v28 = vpack.c.bf16 %v564_v24, %v563_v20  ;;  %v541_v29 = vadd.f32 %v540_v27, %v1627_v48  ;;  %1267 = vmatpush3.bf16.msra.mxu0 %v1614_v44  ;;  %v569_v32 = vmax.f32 %v549_v26, 0.0  ;;  %v1372_v44 = vld [vmem:[%s1704_s2 + $0x80] sm:$0xff]  }
 0x1c6   : > { %v1227_v30 = vpop.f32.mrf.mxu1  ;;  %1268 = vmatprep.subr.bf16.mxu0 %v1620_v45  ;;  %1299 = vmatprep.subr.bf16.mxu1 %v1372_v44 }
 0x1c7   : > { %v552_v31 = vadd.f32 %v1227_v30, %v1627_v48  ;;  %1252 = vmatprep.mubr.bf16.mxu0 %v575_v28  ;;  %v567_v34 = vmax.f32 %v541_v29, 0.0  ;;  %1307 = vmatpush3.bf16.msra.mxu1 %v1372_v44 }
 0x1c8   : > { %v543_v33 = vpop.f32.mrf.mxu1  ;;  %1253 = vmatmul.mubr.bf16.gmra.mxu0 %v576_v25 }
 0x1c9   : > { %v570_v35 = vmax.f32 %v552_v31, 0.0  ;;  %v544_v36 = vadd.f32 %v543_v33, %v1627_v48  ;;  %1269 = vmatpush3.bf16.msra.mxu0 %v1620_v45  ;;  %v598_v45 = vsub.s32 2, %v1584_v40 }
 0x1ca   : > { %1270 = vmatprep.subr.bf16.mxu0 %v1370_v41 }
 0x1cb   : > { %v568_v37 = vmax.f32 %v544_v36, 0.0  ;;  %v578_v38 = vpack.c.bf16 %v570_v35, %v569_v32  ;;  %v599_v47 = vrot.slane %v1590_v42, %v598_v45 }
 0x1cd   : > { %v577_v39 = vpack.c.bf16 %v568_v37, %v567_v34  ;;  %1271 = vmatpush3.bf16.msra.mxu0 %v1370_v41 }
 0x1ce   : > { %1272 = vmatprep.subr.bf16.mxu0 %v1371_v43 }
 0x1cf   : > { %1256 = vmatprep.mubr.bf16.mxu0 %v577_v39  ;;  %v788_v39 = vsub.s32 3, %v1584_v40 }
 0x1d0   : > { %1257 = vmatmul.mubr.bf16.gmra.mxu0 %v578_v38 }
 0x1d1   : > { %1273 = vmatpush3.bf16.msra.mxu0 %v1371_v43  ;;  %v789_v43 = vrot.slane %v1590_v42, %v788_v39 }
 0x1d2   : > { %1274 = vmatprep.subr.bf16.mxu0 %v1372_v44 }
 0x1d5   : > { %1275 = vmatpush3.bf16.msra.mxu0 %v1372_v44 }
 0x278   : > { %v1246_v46 = vpop.f32.mrf.mxu0 }
 0x279   : > { %v691_v52 = vadd.f32 %v1246_v46, %v599_v47 }
 0x27a   : > { %v682_v48 = vpop.f32.mrf.mxu0 }
 0x27b   : > { %v683_v50 = vadd.f32 %v682_v48, %v599_v47  ;;  %v747_v59 = vmax.f32 %v691_v52, 0.0 }
 0x27c   : > { %v1247_v49 = vpop.f32.mrf.mxu0 }
 0x27d   : > { %v694_v51 = vadd.f32 %v1247_v49, %v599_v47  ;;  %v745_v57 = vmax.f32 %v683_v50, 0.0 }
 0x27e   : > { %v685_v53 = vpop.f32.mrf.mxu0 }
 0x27f   : > { %v686_v54 = vadd.f32 %v685_v53, %v599_v47  ;;  %v748_v55 = vmax.f32 %v694_v51, 0.0 }
 0x280   : > { %v1250_v56 = vpop.f32.mrf.mxu0 }
 0x281   : > { %v746_v58 = vmax.f32 %v686_v54, 0.0  ;;  %v762_v62 = vpack.c.bf16 %v748_v55, %v747_v59  ;;  %v707_v2 = vadd.f32 %v1250_v56, %v599_v47 }
 0x282   : > { %v698_v60 = vpop.f32.mrf.mxu0 }
 0x283   : > { %v761_v61 = vpack.c.bf16 %v746_v58, %v745_v57  ;;  %v699_v0 = vadd.f32 %v698_v60, %v599_v47  ;;  %v751_v9 = vmax.f32 %v707_v2, 0.0 }
 0x284   : > { %v1251_v63 = vpop.f32.mrf.mxu0 }
 0x285   : > { %v710_v1 = vadd.f32 %v1251_v63, %v599_v47  ;;  %1276 = vmatprep.mubr.bf16.mxu0 %v761_v61  ;;  %v749_v7 = vmax.f32 %v699_v0, 0.0 }
 0x286   : > { %v701_v3 = vpop.f32.mrf.mxu0  ;;  %1277 = vmatmul.mubr.bf16.vlgmr.msra.gmra.mxu0 %v762_v62 }
 0x287   : > { %v702_v4 = vadd.f32 %v701_v3, %v599_v47  ;;  %v752_v5 = vmax.f32 %v710_v1, 0.0 }
 0x288   : > { %v1254_v6 = vpop.f32.mrf.mxu0 }
 0x289   : > { %v750_v8 = vmax.f32 %v702_v4, 0.0  ;;  %v764_v12 = vpack.c.bf16 %v752_v5, %v751_v9  ;;  %v723_v16 = vadd.f32 %v1254_v6, %v599_v47 }
 0x28a   : > { %v714_v10 = vpop.f32.mrf.mxu0 }
 0x28b   : > { %v763_v11 = vpack.c.bf16 %v750_v8, %v749_v7  ;;  %v715_v14 = vadd.f32 %v714_v10, %v599_v47  ;;  %v755_v23 = vmax.f32 %v723_v16, 0.0 }
 0x28c   : > { %v1255_v13 = vpop.f32.mrf.mxu0 }
 0x28d   : > { %v726_v15 = vadd.f32 %v1255_v13, %v599_v47  ;;  %1280 = vmatprep.mubr.bf16.mxu1 %v763_v11  ;;  %v753_v21 = vmax.f32 %v715_v14, 0.0 }
 0x28e   : > { %v717_v17 = vpop.f32.mrf.mxu0  ;;  %1281 = vmatmul.mubr.bf16.vlgmr.msra.gmra.mxu1 %v764_v12 }
 0x28f   : > { %v718_v18 = vadd.f32 %v717_v17, %v599_v47  ;;  %v756_v19 = vmax.f32 %v726_v15, 0.0 }
 0x290   : > { %v1258_v20 = vpop.f32.mrf.mxu0 }
 0x291   : > { %v754_v22 = vmax.f32 %v718_v18, 0.0  ;;  %v739_v24 = vadd.f32 %v1258_v20, %v599_v47  ;;  %v766_v28 = vpack.c.bf16 %v756_v19, %v755_v23 }
 0x292   : > { %v730_v25 = vpop.f32.mrf.mxu0 }
 0x293   : > { %v765_v26 = vpack.c.bf16 %v754_v22, %v753_v21  ;;  %v731_v27 = vadd.f32 %v730_v25, %v599_v47  ;;  %v759_v31 = vmax.f32 %v739_v24, 0.0 }
 0x294   : > { %v1259_v29 = vpop.f32.mrf.mxu0 }
 0x295   : > { %v742_v30 = vadd.f32 %v1259_v29, %v599_v47  ;;  %1284 = vmatprep.mubr.bf16.mxu1 %v765_v26  ;;  %v757_v33 = vmax.f32 %v731_v27, 0.0 }
 0x296   : > { %v733_v32 = vpop.f32.mrf.mxu0  ;;  %1285 = vmatmul.mubr.bf16.gmra.mxu1 %v766_v28 }
 0x297   : > { %v760_v34 = vmax.f32 %v742_v30, 0.0  ;;  %v734_v35 = vadd.f32 %v733_v32, %v599_v47 }
 0x299   : > { %v758_v36 = vmax.f32 %v734_v35, 0.0  ;;  %v768_v37 = vpack.c.bf16 %v760_v34, %v759_v31 }
 0x29b   : > { %v767_v38 = vpack.c.bf16 %v758_v36, %v757_v33 }
 0x29d   : > { %1288 = vmatprep.mubr.bf16.mxu1 %v767_v38 }
 0x29e   : > { %1289 = vmatmul.mubr.bf16.gmra.mxu1 %v768_v37 }
 0x346   : > { %v1278_v41 = vpop.f32.mrf.mxu0 }
 0x347   : > { %v881_v51 = vadd.f32 %v1278_v41, %v789_v43 }
 0x348   : > { %v872_v44 = vpop.f32.mrf.mxu0 }
 0x349   : > { %v873_v45 = vadd.f32 %v872_v44, %v789_v43 }
 0x34a   : > { %v1279_v46 = vpop.f32.mrf.mxu0 }
 0x34b   : > { %935 = vxpose.xlu0.b32.start [1/16] (narrow) %v873_v45, 8  ;;  %v884_v52 = vadd.f32 %v1279_v46, %v789_v43 }
 0x34c   : > { %v875_v48 = vpop.f32.mrf.mxu0 }
 0x34d   : > { %v876_v49 = vadd.f32 %v875_v48, %v789_v43 }
 0x34e   : > { %v1282_v50 = vpop.f32.mrf.mxu1 }
 0x34f   : > { %936 = vxpose.xlu0.b32.cont [2/16] (narrow) %v876_v49, 8  ;;  %v897_v42 = vadd.f32 %v1282_v50, %v789_v43 }
 0x350   : > { %v888_v47 = vpop.f32.mrf.mxu1 }
 0x351   : > { %v889_v54 = vadd.f32 %v888_v47, %v789_v43 }
 0x352   : > { %v1283_v53 = vpop.f32.mrf.mxu1 }
 0x353   : > { %937 = vxpose.xlu0.b32.cont [3/16] (narrow) %v881_v51, 8  ;;  %v900_v58 = vadd.f32 %v1283_v53, %v789_v43 }
 0x354   : > { %v891_v55 = vpop.f32.mrf.mxu1 }
 0x355   : > { %v892_v40 = vadd.f32 %v891_v55, %v789_v43 }
 0x356   : > { %v1286_v56 = vpop.f32.mrf.mxu1 }
 0x357   : > { %938 = vxpose.xlu0.b32.cont [4/16] (narrow) %v884_v52, 8  ;;  %v913_v0 = vadd.f32 %v1286_v56, %v789_v43 }
 0x358   : > { %v904_v57 = vpop.f32.mrf.mxu1 }
 0x359   : > { %v905_v60 = vadd.f32 %v904_v57, %v789_v43 }
 0x35a   : > { %v1287_v59 = vpop.f32.mrf.mxu1 }
 0x35b   : > { %939 = vxpose.xlu0.b32.cont [5/16] (narrow) %v889_v54, 8  ;;  %v916_v2 = vadd.f32 %v1287_v59, %v789_v43 }
 0x35c   : > { %v907_v61 = vpop.f32.mrf.mxu1 }
 0x35d   : > { %v908_v62 = vadd.f32 %v907_v61, %v789_v43 }
 0x35e   : > { %v1290_v63 = vpop.f32.mrf.mxu1 }
 0x35f   : > { %940 = vxpose.xlu0.b32.cont [6/16] (narrow) %v892_v40, 8  ;;  %v929_v7 = vadd.f32 %v1290_v63, %v789_v43 }
 0x360   : > { %v920_v1 = vpop.f32.mrf.mxu1 }
 0x361   : > { %v921_v4 = vadd.f32 %v920_v1, %v789_v43 }
 0x362   : > { %v1291_v3 = vpop.f32.mrf.mxu1 }
 0x363   : > { %941 = vxpose.xlu0.b32.cont [7/16] (narrow) %v897_v42, 8  ;;  %v932_v8 = vadd.f32 %v1291_v3, %v789_v43 }
 0x364   : > { %v923_v5 = vpop.f32.mrf.mxu1 }
 0x365   : > { %v924_v6 = vadd.f32 %v923_v5, %v789_v43 }
 0x367   : > { %942 = vxpose.xlu0.b32.cont [8/16] (narrow) %v900_v58, 8 }
 0x36b   : > { %943 = vxpose.xlu0.b32.cont [9/16] (narrow) %v905_v60, 8 }
 0x36f   : > { %944 = vxpose.xlu0.b32.cont [10/16] (narrow) %v908_v62, 8 }
 0x373   : > { %945 = vxpose.xlu0.b32.cont [11/16] (narrow) %v913_v0, 8 }
 0x377   : > { %946 = vxpose.xlu0.b32.cont [12/16] (narrow) %v916_v2, 8 }
 0x37b   : > { %947 = vxpose.xlu0.b32.cont [13/16] (narrow) %v921_v4, 8 }
 0x37f   : > { %948 = vxpose.xlu0.b32.cont [14/16] (narrow) %v924_v6, 8 }
 0x383   : > { %949 = vxpose.xlu0.b32.cont [15/16] (narrow) %v929_v7, 8 }
 0x387   : > { %950 = vxpose.xlu0.b32.end [16/16] (narrow) %v932_v8, 8 }
 0x3c7   : > { %v951_v9 = vpop.trf.xlu0 }
 0x3c8   : > { %967 = vst [vmem:[%s191_s11] sm:$0xff] %v951_v9 }
 0x3c9   : > { %1386 = shalt.err (!%p1383_p3)
}
 0x3ca   : > { %s1387_s30 = scalar_lea.hbm %s980_s22, 128  ;;  %s1391_s7 = scalar_lea.hbm %s1706_s4, 512 }
 0x3cb   : > { %p1388_p4 = scmp.ne.s32.totalorder %s980_s22, %s1387_s30  ;;  %p1392_p9 = scmp.lt.s32.totalorder %s980_s22, %s1706_s4 }
 0x3cc   : > { %p1393_p10 = scmp.lt.s32.totalorder %s1391_s7, %s1387_s30 }
 0x3cd   : > { %p1389_p7 = pnand %p1388_p4, %p1499_p5 }
 0x3ce   : > { %p1394_p11 = por %p1393_p10, %p1392_p9 }
 0x3cf   : > { %p1390_p8 = pneg %p1389_p7 }
 0x3d1   : > { %p1395_p12 = pnand %p1394_p11, %p1390_p8 }
 0x3d3   : > { %1398 = shalt.err (!%p1395_p12)
}
 0x3d4   : > { %1308 = dma.vmem_to_hbm [thread:$0]  (%p1499_p5), %s1664_s12, 128, %s980_s22, %s969_s23  }
 0x3d5 PF: > { %p1314_p13 = scmp.ge.s32.totalorder %s1433_s18, 2  ;;  %s994_s10 = sand.u32 1, %s1421_s15  }
 0x3d6   : > { %s995_s11 = scalar_lea.sflag [#allocation3], %s994_s10 }
 0x3d7   : > { %p1311_p0 = pnand %p1314_p13, %p1503_p6 }
 0x3d9   : > { %p1312_p1 = pneg %p1311_p0 }
 0x3db   : > { %1416 = dma.done.wait (%p1312_p1), %s995_s11, 128  }
 0x3dc   : > { %1418 = vsyncadd (%p1312_p1), %s995_s11, 4294967168  ;;  %p14_p2 = scmp.ge.s32.totalorder %s1486_s21, 6   ;;  %s1709_s15 = smov %s1425_s16 }
 0x3dd   : > { %s1710_s16 = smov %s1429_s17  ;;  %s1711_s17 = smov %s1497_s24 }
 0x3de   : > { %s1712_s18 = smov %s1486_s21  ;;  %16 = sbr.rel (!%p14_p2) target bundleno = 3 (0x3), region = 73 }
 0x3e3   :  { %1000 = vsyncpa [#allocation3], 1 }
 0x3e4   :  { %1002 = vsyncpa [#allocation3 + $0x1], 1 }

</bundles_post_ra>
